<compile_context>
chip_gen: v7x
topology: tpu7x:2x2x1
jax: 0.10.0
libtpu: 0.0.40
codegen_flags: <defaults>
</compile_context>

<pallas_src>
import jax
import jax.numpy as jnp
from jax import lax
from jax.experimental import pallas as pl
from jax.experimental.pallas import tpu as pltpu


# ---------------------------------------------------------------------------
# Kernels
# ---------------------------------------------------------------------------

def _mlp_tile(x_ref, w1_ref, b1_ref, w2_ref, b2_ref):
    """Pre-sigmoid layer-2 output z for one batch tile, lane-major (1, tb)."""
    # Layer 1 on the MXU: (tb, D) @ (D, H) -> (tb, H), f32 accumulation.
    h = jnp.dot(x_ref[...], w1_ref[...], preferred_element_type=jnp.float32)
    h = jnp.maximum(h + b1_ref[...], 0.0)                     # bias + ReLU (VPU)
    # Layer 2: contract w2 (1, H) with h (tb, H) over H (A @ B^T, same pattern
    # as attention q @ k^T), so the result is already (1, tb) lane-major.
    z = lax.dot_general(
        w2_ref[...], h,
        dimension_numbers=(((1,), (1,)), ((), ())),
        preferred_element_type=jnp.float32)                   # (1, tb)
    return z + b2_ref[...]                                    # broadcast (1, 1)


def _sigmoid(z):
    # tanh formulation: the transcendental goes to the EUP slot, no VALU divide.
    return 0.5 * (jnp.tanh(0.5 * z) + 1.0)


def spam_regressor_kernel(x_ref, w1_ref, b1_ref, w2_ref, b2_ref, probs_ref):
    """Inference: probs (1, tb), lane-dense."""
    probs_ref[...] = _sigmoid(_mlp_tile(x_ref, w1_ref, b1_ref, w2_ref, b2_ref))


def spam_regressor_loss_kernel(x_ref, w1_ref, b1_ref, w2_ref, b2_ref, y_ref,
                               probs_ref, loss_ref):
    """Training-style forward: probs + per-element BCE, both (1, tb) lane-dense."""
    z = _mlp_tile(x_ref, w1_ref, b1_ref, w2_ref, b2_ref)
    probs_ref[...] = _sigmoid(z)
    # Per-element BCE computed from z in stable log-sigmoid form, with the same
    # -100 clamp torch.nn.BCELoss applies to log(p) / log(1 - p).
    y = y_ref[...]
    softplus = jnp.log(1.0 + jnp.exp(-jnp.abs(z)))            # log1p(exp(-|z|)), EUP
    log_p = jnp.maximum(jnp.minimum(z, 0.0) - softplus, -100.0)      # log sigmoid(z)
    log_1mp = jnp.maximum(jnp.minimum(-z, 0.0) - softplus, -100.0)   # log sigmoid(-z)
    loss_ref[...] = -(y * log_p + (1.0 - y) * log_1mp)


# ---------------------------------------------------------------------------
# Wrapper
# ---------------------------------------------------------------------------

def _round_up(x, m):
    return (x + m - 1) // m * m


def spam_regressor_forward(vectors, w1, b1, w2, b2, labels=None, *, tb=512):
    """Pallas-backed equivalent of SpamRegressor.forward.

    vectors: (B, D) float32
    w1: (D, H)  (transpose of torch fc1.weight), b1: (1, H) or (H,)
    w2: (H, 1)  (transpose of torch fc2.weight), b2: (1, 1) or scalar
    labels (optional): (B, 1) float32 in [0, 1]
    Returns {'logits': (B, 1) sigmoid probabilities, ['loss': scalar BCE]}.
    """
    vectors = jnp.asarray(vectors, jnp.float32)
    B, D = vectors.shape
    H = jnp.asarray(w1).shape[1]

    # Pad features/hidden to 128 multiples and batch to a multiple of the tile.
    D_pad = _round_up(D, 128)
    H_pad = _round_up(H, 128)
    tb_eff = min(_round_up(tb, 128), _round_up(B, 128))
    B_pad = _round_up(B, tb_eff)
    grid = (B_pad // tb_eff,)

    x_p = jnp.pad(vectors, ((0, B_pad - B), (0, D_pad - D)))
    w1_p = jnp.pad(jnp.asarray(w1, jnp.float32), ((0, D_pad - D), (0, H_pad - H)))
    b1_p = jnp.pad(jnp.asarray(b1, jnp.float32).reshape(1, H), ((0, 0), (0, H_pad - H)))
    w2_p = jnp.pad(jnp.asarray(w2, jnp.float32).reshape(1, H), ((0, 0), (0, H_pad - H)))
    b2_p = jnp.asarray(b2, jnp.float32).reshape(1, 1)

    x_spec = pl.BlockSpec((tb_eff, D_pad), lambda i: (i, 0))
    row_spec = pl.BlockSpec((1, tb_eff), lambda i: (0, i))     # lane-dense batch rows
    row_shape = jax.ShapeDtypeStruct((1, B_pad), jnp.float32)

    def call(single_buffer_invariants):
        # Grid-invariant operands: one VMEM copy instead of the default double
        # buffer (matters when document_vector_size is large, esp. on v7x).
        inv = (dict(pipeline_mode=pl.Buffered(1))
               if single_buffer_invariants else {})
        w1_spec = pl.BlockSpec((D_pad, H_pad), lambda i: (0, 0), **inv)
        b1_spec = pl.BlockSpec((1, H_pad), lambda i: (0, 0), **inv)
        w2_spec = pl.BlockSpec((1, H_pad), lambda i: (0, 0), **inv)
        b2_spec = pl.BlockSpec((1, 1), lambda i: (0, 0), **inv)
        common = dict(
            grid=grid,
            compiler_params=pltpu.CompilerParams(
                dimension_semantics=("parallel",)),
        )
        if labels is None:
            return pl.pallas_call(
                spam_regressor_kernel,
                out_shape=row_shape,
                in_specs=[x_spec, w1_spec, b1_spec, w2_spec, b2_spec],
                out_specs=row_spec,
                **common,
            )(x_p, w1_p, b1_p, w2_p, b2_p)
        y_p = jnp.pad(jnp.asarray(labels, jnp.float32).reshape(1, B),
                      ((0, 0), (0, B_pad - B)))
        return pl.pallas_call(
            spam_regressor_loss_kernel,
            out_shape=(row_shape, row_shape),
            in_specs=[x_spec, w1_spec, b1_spec, w2_spec, b2_spec, row_spec],
            out_specs=(row_spec, row_spec),
            **common,
        )(x_p, w1_p, b1_p, w2_p, b2_p, y_p)

    try:
        outs = call(True)
    except Exception:       # fallback if this JAX rejects pl.Buffered(1)
        outs = call(False)

    if labels is None:
        probs_row = outs
        return {"logits": probs_row[0, :B].reshape(B, 1)}

    probs_row, loss_row = outs
    return {
        "logits": probs_row[0, :B].reshape(B, 1),
        # Final reduction over B scalars is trivial glue; padded rows excluded.
        "loss": jnp.sum(loss_row[0, :B]) / B,
    }


# ---------------------------------------------------------------------------
# Self-test
# ---------------------------------------------------------------------------

if __name__ == "__main__":
    # Shapes consistent with the module's config:
    #   document_vector_size = 32, hidden_layer_size = 32, batch = 16
    B, D, H = 16, 32, 32

    key = jax.random.PRNGKey(0)
    k_x, k_w1, k_b1, k_w2, k_b2, k_y = jax.random.split(key, 6)

    vectors = jax.random.normal(k_x, (B, D), dtype=jnp.float32)
    w1 = jax.random.normal(k_w1, (D, H), dtype=jnp.float32) * (1.0 / D) ** 0.5
    b1 = jax.random.normal(k_b1, (1, H), dtype=jnp.float32) * 0.01
    w2 = jax.random.normal(k_w2, (H, 1), dtype=jnp.float32) * (1.0 / H) ** 0.5
    b2 = jax.random.normal(k_b2, (1, 1), dtype=jnp.float32) * 0.01
    labels = (jax.random.uniform(k_y, (B, 1)) > 0.5).astype(jnp.float32)

    out = spam_regressor_forward(vectors, w1, b1, w2, b2, labels=labels)
    probs = jax.block_until_ready(out["logits"])
    loss = jax.block_until_ready(out["loss"])

    # Plain-JAX reference (torch.nn semantics).
    h_ref = jnp.maximum(vectors @ w1 + b1, 0.0)
    p_ref = jax.nn.sigmoid(h_ref @ w2 + b2)
    log_p = jnp.maximum(jnp.log(p_ref), -100.0)
    log_1mp = jnp.maximum(jnp.log(1.0 - p_ref), -100.0)
    loss_ref = -jnp.mean(labels * log_p + (1.0 - labels) * log_1mp)

    assert probs.shape == (B, 1)
    assert jnp.allclose(probs, p_ref, atol=1e-5, rtol=1e-5), "probs mismatch vs reference"
    assert jnp.isfinite(loss)
    assert jnp.allclose(loss, loss_ref, atol=1e-5, rtol=1e-5), "loss mismatch vs reference"

    # Also exercise the inference-only path (no labels).
    out_infer = spam_regressor_forward(vectors, w1, b1, w2, b2)
    probs2 = jax.block_until_ready(out_infer["logits"])
    assert jnp.allclose(probs2, p_ref, atol=1e-5, rtol=1e-5), "probs mismatch (no labels)"

    print("KERNEL_OK")
</pallas_src>

<mosaic_0001>
module attributes {stable_mosaic.version = 11 : i64} {
  func.func @spam_regressor_loss_kernel(%arg0: i32, %arg1: memref<128x128xf32, #tpu.memory_space<vmem>>, %arg2: memref<128x128xf32, #tpu.memory_space<vmem>>, %arg3: memref<1x128xf32, #tpu.memory_space<vmem>>, %arg4: memref<1x128xf32, #tpu.memory_space<vmem>>, %arg5: memref<1x1xf32, #tpu.memory_space<vmem>>, %arg6: memref<1x128xf32, #tpu.memory_space<vmem>>, %arg7: memref<1x128xf32, #tpu.memory_space<vmem>>, %arg8: memref<1x128xf32, #tpu.memory_space<vmem>>) attributes {dimension_semantics = [#tpu.dimension_semantics<parallel>], iteration_bounds = array<i64: 1>, scalar_prefetch = 0 : i64, scratch_operands = 0 : i64, tpu.core_type = #tpu.core_type<tc>, window_params = [{transform_indices = @transform_0, window_bounds = array<i64: 128, 128>}, {pipeline_mode = #tpu.pipeline_mode<synchronous>, transform_indices = @transform_1, window_bounds = array<i64: 128, 128>}, {pipeline_mode = #tpu.pipeline_mode<synchronous>, transform_indices = @transform_2, window_bounds = array<i64: 1, 128>}, {pipeline_mode = #tpu.pipeline_mode<synchronous>, transform_indices = @transform_3, window_bounds = array<i64: 1, 128>}, {pipeline_mode = #tpu.pipeline_mode<synchronous>, transform_indices = @transform_4, window_bounds = array<i64: 1, 1>}, {transform_indices = @transform_5, window_bounds = array<i64: 1, 128>}, {transform_indices = @transform_6, window_bounds = array<i64: 1, 128>}, {transform_indices = @transform_7, window_bounds = array<i64: 1, 128>}]} {
    %c0 = arith.constant 0 : index
    %c0_0 = arith.constant 0 : index
    %0 = vector.load %arg1[%c0, %c0_0] : memref<128x128xf32, #tpu.memory_space<vmem>>, vector<128x128xf32>
    %c0_1 = arith.constant 0 : index
    %c0_2 = arith.constant 0 : index
    %1 = vector.load %arg2[%c0_1, %c0_2] : memref<128x128xf32, #tpu.memory_space<vmem>>, vector<128x128xf32>
    %cst = arith.constant dense<0.000000e+00> : vector<128x128xf32>
    %2 = tpu.matmul %0, %1, %cst {dimension_numbers = #tpu.dot_dimension_numbers<[1], [0], [0], [1], [0, 0, 1, 1], [], []>} : vector<128x128xf32>, vector<128x128xf32>, vector<128x128xf32> -> vector<128x128xf32>
    %c0_3 = arith.constant 0 : index
    %c0_4 = arith.constant 0 : index
    %3 = vector.load %arg3[%c0_3, %c0_4] : memref<1x128xf32, #tpu.memory_space<vmem>>, vector<1x128xf32>
    %4 = vector.broadcast %3 : vector<1x128xf32> to vector<128x128xf32>
    %5 = arith.addf %2, %4 : vector<128x128xf32>
    %cst_5 = arith.constant 0.000000e+00 : f32
    %6 = vector.broadcast %cst_5 : f32 to vector<128x128xf32>
    %7 = arith.maximumf %5, %6 : vector<128x128xf32>
    %c0_6 = arith.constant 0 : index
    %c0_7 = arith.constant 0 : index
    %8 = vector.load %arg4[%c0_6, %c0_7] : memref<1x128xf32, #tpu.memory_space<vmem>>, vector<1x128xf32>
    %cst_8 = arith.constant dense<0.000000e+00> : vector<1x128xf32>
    %9 = tpu.matmul %8, %7, %cst_8 {dimension_numbers = #tpu.dot_dimension_numbers<[1], [1], [0], [0], [0, 0, 1, 0], [], []>} : vector<1x128xf32>, vector<128x128xf32>, vector<1x128xf32> -> vector<1x128xf32>
    %c0_9 = arith.constant 0 : index
    %c0_10 = arith.constant 0 : index
    %10 = vector.load %arg5[%c0_9, %c0_10] : memref<1x1xf32, #tpu.memory_space<vmem>>, vector<1x1xf32>
    %11 = vector.broadcast %10 : vector<1x1xf32> to vector<1x128xf32>
    %12 = arith.addf %9, %11 : vector<1x128xf32>
    %cst_11 = arith.constant 5.000000e-01 : f32
    %13 = vector.broadcast %cst_11 : f32 to vector<1x128xf32>
    %14 = arith.mulf %13, %12 : vector<1x128xf32>
    %15 = math.tanh %14 : vector<1x128xf32>
    %cst_12 = arith.constant 1.000000e+00 : f32
    %16 = vector.broadcast %cst_12 : f32 to vector<1x128xf32>
    %17 = arith.addf %15, %16 : vector<1x128xf32>
    %cst_13 = arith.constant 5.000000e-01 : f32
    %18 = vector.broadcast %cst_13 : f32 to vector<1x128xf32>
    %19 = arith.mulf %18, %17 : vector<1x128xf32>
    %c0_14 = arith.constant 0 : index
    %c0_15 = arith.constant 0 : index
    %20 = vector.load %arg7[%c0_14, %c0_15] : memref<1x128xf32, #tpu.memory_space<vmem>>, vector<1x128xf32>
    tpu.vector_store %arg7[%c0_14, %c0_15], %19 {strides = array<i32>} : memref<1x128xf32, #tpu.memory_space<vmem>>, vector<1x128xf32>,
    %c0_16 = arith.constant 0 : index
    %c0_17 = arith.constant 0 : index
    %21 = vector.load %arg6[%c0_16, %c0_17] : memref<1x128xf32, #tpu.memory_space<vmem>>, vector<1x128xf32>
    %22 = math.absf %12 : vector<1x128xf32>
    %cst_18 = arith.constant 0.000000e+00 : f32
    %23 = vector.broadcast %cst_18 : f32 to vector<1x128xf32>
    %24 = arith.subf %23, %22 : vector<1x128xf32>
    %25 = math.exp %24 : vector<1x128xf32>
    %cst_19 = arith.constant 1.000000e+00 : f32
    %26 = vector.broadcast %cst_19 : f32 to vector<1x128xf32>
    %27 = arith.addf %26, %25 : vector<1x128xf32>
    %28 = math.log %27 : vector<1x128xf32>
    %cst_20 = arith.constant 0.000000e+00 : f32
    %29 = vector.broadcast %cst_20 : f32 to vector<1x128xf32>
    %30 = arith.minimumf %12, %29 : vector<1x128xf32>
    %31 = arith.subf %30, %28 : vector<1x128xf32>
    %cst_21 = arith.constant -1.000000e+02 : f32
    %32 = vector.broadcast %cst_21 : f32 to vector<1x128xf32>
    %33 = arith.maximumf %31, %32 : vector<1x128xf32>
    %cst_22 = arith.constant 0.000000e+00 : f32
    %34 = vector.broadcast %cst_22 : f32 to vector<1x128xf32>
    %35 = arith.subf %34, %12 : vector<1x128xf32>
    %cst_23 = arith.constant 0.000000e+00 : f32
    %36 = vector.broadcast %cst_23 : f32 to vector<1x128xf32>
    %37 = arith.minimumf %35, %36 : vector<1x128xf32>
    %38 = arith.subf %37, %28 : vector<1x128xf32>
    %cst_24 = arith.constant -1.000000e+02 : f32
    %39 = vector.broadcast %cst_24 : f32 to vector<1x128xf32>
    %40 = arith.maximumf %38, %39 : vector<1x128xf32>
    %41 = arith.mulf %21, %33 : vector<1x128xf32>
    %cst_25 = arith.constant 1.000000e+00 : f32
    %42 = vector.broadcast %cst_25 : f32 to vector<1x128xf32>
    %43 = arith.subf %42, %21 : vector<1x128xf32>
    %44 = arith.mulf %43, %40 : vector<1x128xf32>
    %45 = arith.addf %41, %44 : vector<1x128xf32>
    %cst_26 = arith.constant 0.000000e+00 : f32
    %46 = vector.broadcast %cst_26 : f32 to vector<1x128xf32>
    %47 = arith.subf %46, %45 : vector<1x128xf32>
    %c0_27 = arith.constant 0 : index
    %c0_28 = arith.constant 0 : index
    %48 = vector.load %arg8[%c0_27, %c0_28] : memref<1x128xf32, #tpu.memory_space<vmem>>, vector<1x128xf32>
    tpu.vector_store %arg8[%c0_27, %c0_28], %47 {strides = array<i32>} : memref<1x128xf32, #tpu.memory_space<vmem>>, vector<1x128xf32>,
    return
  }
  func.func @transform_0(%arg0: i32) -> (i32, i32) {
    %c0_i32 = arith.constant 0 : i32
    %c0_i32_0 = arith.constant 0 : i32
    return %arg0, %c0_i32 : i32, i32
  }
  func.func @transform_1(%arg0: i32) -> (i32, i32) {
    %c0_i32 = arith.constant 0 : i32
    %c0_i32_0 = arith.constant 0 : i32
    %c0_i32_1 = arith.constant 0 : i32
    return %c0_i32, %c0_i32_0 : i32, i32
  }
  func.func @transform_2(%arg0: i32) -> (i32, i32) {
    %c0_i32 = arith.constant 0 : i32
    %c0_i32_0 = arith.constant 0 : i32
    %c0_i32_1 = arith.constant 0 : i32
    return %c0_i32, %c0_i32_0 : i32, i32
  }
  func.func @transform_3(%arg0: i32) -> (i32, i32) {
    %c0_i32 = arith.constant 0 : i32
    %c0_i32_0 = arith.constant 0 : i32
    %c0_i32_1 = arith.constant 0 : i32
    return %c0_i32, %c0_i32_0 : i32, i32
  }
  func.func @transform_4(%arg0: i32) -> (i32, i32) {
    %c0_i32 = arith.constant 0 : i32
    %c0_i32_0 = arith.constant 0 : i32
    %c0_i32_1 = arith.constant 0 : i32
    return %c0_i32, %c0_i32_0 : i32, i32
  }
  func.func @transform_5(%arg0: i32) -> (i32, i32) {
    %c0_i32 = arith.constant 0 : i32
    %c0_i32_0 = arith.constant 0 : i32
    return %c0_i32, %arg0 : i32, i32
  }
  func.func @transform_6(%arg0: i32) -> (i32, i32) {
    %c0_i32 = arith.constant 0 : i32
    %c0_i32_0 = arith.constant 0 : i32
    return %c0_i32, %arg0 : i32, i32
  }
  func.func @transform_7(%arg0: i32) -> (i32, i32) {
    %c0_i32 = arith.constant 0 : i32
    %c0_i32_0 = arith.constant 0 : i32
    return %c0_i32, %arg0 : i32, i32
  }
}

module attributes {stable_mosaic.version = 11 : i64} {
  func.func @spam_regressor_loss_kernel(%arg0: i32, %arg1: memref<128x128xf32, #tpu.memory_space<vmem>>, %arg2: memref<128x128xf32, #tpu.memory_space<vmem>>, %arg3: memref<1x128xf32, #tpu.memory_space<vmem>>, %arg4: memref<1x128xf32, #tpu.memory_space<vmem>>, %arg5: memref<1x1xf32, #tpu.memory_space<vmem>>, %arg6: memref<1x128xf32, #tpu.memory_space<vmem>>, %arg7: memref<1x128xf32, #tpu.memory_space<vmem>>, %arg8: memref<1x128xf32, #tpu.memory_space<vmem>>) attributes {dimension_semantics = [#tpu.dimension_semantics<parallel>], iteration_bounds = array<i64: 1>, scalar_prefetch = 0 : i64, scratch_operands = 0 : i64, tpu.core_type = #tpu.core_type<tc>, window_params = [{transform_indices = @transform_0, window_bounds = array<i64: 128, 128>}, {pipeline_mode = #tpu.pipeline_mode<synchronous>, transform_indices = @transform_1, window_bounds = array<i64: 128, 128>}, {pipeline_mode = #tpu.pipeline_mode<synchronous>, transform_indices = @transform_2, window_bounds = array<i64: 1, 128>}, {pipeline_mode = #tpu.pipeline_mode<synchronous>, transform_indices = @transform_3, window_bounds = array<i64: 1, 128>}, {pipeline_mode = #tpu.pipeline_mode<synchronous>, transform_indices = @transform_4, window_bounds = array<i64: 1, 1>}, {transform_indices = @transform_5, window_bounds = array<i64: 1, 128>}, {transform_indices = @transform_6, window_bounds = array<i64: 1, 128>}, {transform_indices = @transform_7, window_bounds = array<i64: 1, 128>}]} {
    %c0 = arith.constant 0 : index
    %c0_0 = arith.constant 0 : index
    %0 = vector.load %arg1[%c0, %c0_0] : memref<128x128xf32, #tpu.memory_space<vmem>>, vector<128x128xf32>
    %c0_1 = arith.constant 0 : index
    %c0_2 = arith.constant 0 : index
    %1 = vector.load %arg2[%c0_1, %c0_2] : memref<128x128xf32, #tpu.memory_space<vmem>>, vector<128x128xf32>
    %cst = arith.constant dense<0.000000e+00> : vector<128x128xf32>
    %2 = tpu.matmul %0, %1, %cst {dimension_numbers = #tpu.dot_dimension_numbers<[1], [0], [0], [1], [0, 0, 1, 1], [], []>} : vector<128x128xf32>, vector<128x128xf32>, vector<128x128xf32> -> vector<128x128xf32>
    %c0_3 = arith.constant 0 : index
    %c0_4 = arith.constant 0 : index
    %3 = vector.load %arg3[%c0_3, %c0_4] : memref<1x128xf32, #tpu.memory_space<vmem>>, vector<1x128xf32>
    %4 = vector.broadcast %3 : vector<1x128xf32> to vector<128x128xf32>
    %5 = arith.addf %2, %4 : vector<128x128xf32>
    %cst_5 = arith.constant 0.000000e+00 : f32
    %6 = vector.broadcast %cst_5 : f32 to vector<128x128xf32>
    %7 = arith.maximumf %5, %6 : vector<128x128xf32>
    %c0_6 = arith.constant 0 : index
    %c0_7 = arith.constant 0 : index
    %8 = vector.load %arg4[%c0_6, %c0_7] : memref<1x128xf32, #tpu.memory_space<vmem>>, vector<1x128xf32>
    %cst_8 = arith.constant dense<0.000000e+00> : vector<1x128xf32>
    %9 = tpu.matmul %8, %7, %cst_8 {dimension_numbers = #tpu.dot_dimension_numbers<[1], [1], [0], [0], [0, 0, 1, 0], [], []>} : vector<1x128xf32>, vector<128x128xf32>, vector<1x128xf32> -> vector<1x128xf32>
    %c0_9 = arith.constant 0 : index
    %c0_10 = arith.constant 0 : index
    %10 = vector.load %arg5[%c0_9, %c0_10] : memref<1x1xf32, #tpu.memory_space<vmem>>, vector<1x1xf32>
    %11 = vector.broadcast %10 : vector<1x1xf32> to vector<1x128xf32>
    %12 = arith.addf %9, %11 : vector<1x128xf32>
    %cst_11 = arith.constant 5.000000e-01 : f32
    %13 = vector.broadcast %cst_11 : f32 to vector<1x128xf32>
    %14 = arith.mulf %13, %12 : vector<1x128xf32>
    %15 = math.tanh %14 : vector<1x128xf32>
    %cst_12 = arith.constant 1.000000e+00 : f32
    %16 = vector.broadcast %cst_12 : f32 to vector<1x128xf32>
    %17 = arith.addf %15, %16 : vector<1x128xf32>
    %cst_13 = arith.constant 5.000000e-01 : f32
    %18 = vector.broadcast %cst_13 : f32 to vector<1x128xf32>
    %19 = arith.mulf %18, %17 : vector<1x128xf32>
    %c0_14 = arith.constant 0 : index
    %c0_15 = arith.constant 0 : index
    %20 = vector.load %arg7[%c0_14, %c0_15] : memref<1x128xf32, #tpu.memory_space<vmem>>, vector<1x128xf32>
    tpu.vector_store %arg7[%c0_14, %c0_15], %19 {strides = array<i32>} : memref<1x128xf32, #tpu.memory_space<vmem>>, vector<1x128xf32>,
    %c0_16 = arith.constant 0 : index
    %c0_17 = arith.constant 0 : index
    %21 = vector.load %arg6[%c0_16, %c0_17] : memref<1x128xf32, #tpu.memory_space<vmem>>, vector<1x128xf32>
    %22 = math.absf %12 : vector<1x128xf32>
    %cst_18 = arith.constant 0.000000e+00 : f32
    %23 = vector.broadcast %cst_18 : f32 to vector<1x128xf32>
    %24 = arith.subf %23, %22 : vector<1x128xf32>
    %25 = math.exp %24 : vector<1x128xf32>
    %cst_19 = arith.constant 1.000000e+00 : f32
    %26 = vector.broadcast %cst_19 : f32 to vector<1x128xf32>
    %27 = arith.addf %26, %25 : vector<1x128xf32>
    %28 = math.log %27 : vector<1x128xf32>
    %cst_20 = arith.constant 0.000000e+00 : f32
    %29 = vector.broadcast %cst_20 : f32 to vector<1x128xf32>
    %30 = arith.minimumf %12, %29 : vector<1x128xf32>
    %31 = arith.subf %30, %28 : vector<1x128xf32>
    %cst_21 = arith.constant -1.000000e+02 : f32
    %32 = vector.broadcast %cst_21 : f32 to vector<1x128xf32>
    %33 = arith.maximumf %31, %32 : vector<1x128xf32>
    %cst_22 = arith.constant 0.000000e+00 : f32
    %34 = vector.broadcast %cst_22 : f32 to vector<1x128xf32>
    %35 = arith.subf %34, %12 : vector<1x128xf32>
    %cst_23 = arith.constant 0.000000e+00 : f32
    %36 = vector.broadcast %cst_23 : f32 to vector<1x128xf32>
    %37 = arith.minimumf %35, %36 : vector<1x128xf32>
    %38 = arith.subf %37, %28 : vector<1x128xf32>
    %cst_24 = arith.constant -1.000000e+02 : f32
    %39 = vector.broadcast %cst_24 : f32 to vector<1x128xf32>
    %40 = arith.maximumf %38, %39 : vector<1x128xf32>
    %41 = arith.mulf %21, %33 : vector<1x128xf32>
    %cst_25 = arith.constant 1.000000e+00 : f32
    %42 = vector.broadcast %cst_25 : f32 to vector<1x128xf32>
    %43 = arith.subf %42, %21 : vector<1x128xf32>
    %44 = arith.mulf %43, %40 : vector<1x128xf32>
    %45 = arith.addf %41, %44 : vector<1x128xf32>
    %cst_26 = arith.constant 0.000000e+00 : f32
    %46 = vector.broadcast %cst_26 : f32 to vector<1x128xf32>
    %47 = arith.subf %46, %45 : vector<1x128xf32>
    %c0_27 = arith.constant 0 : index
    %c0_28 = arith.constant 0 : index
    %48 = vector.load %arg8[%c0_27, %c0_28] : memref<1x128xf32, #tpu.memory_space<vmem>>, vector<1x128xf32>
    tpu.vector_store %arg8[%c0_27, %c0_28], %47 {strides = array<i32>} : memref<1x128xf32, #tpu.memory_space<vmem>>, vector<1x128xf32>,
    return
  }
  func.func @transform_0(%arg0: i32) -> (i32, i32) {
    %c0_i32 = arith.constant 0 : i32
    %c0_i32_0 = arith.constant 0 : i32
    return %arg0, %c0_i32 : i32, i32
  }
  func.func @transform_1(%arg0: i32) -> (i32, i32) {
    %c0_i32 = arith.constant 0 : i32
    %c0_i32_0 = arith.constant 0 : i32
    %c0_i32_1 = arith.constant 0 : i32
    return %c0_i32, %c0_i32_0 : i32, i32
  }
  func.func @transform_2(%arg0: i32) -> (i32, i32) {
    %c0_i32 = arith.constant 0 : i32
    %c0_i32_0 = arith.constant 0 : i32
    %c0_i32_1 = arith.constant 0 : i32
    return %c0_i32, %c0_i32_0 : i32, i32
  }
  func.func @transform_3(%arg0: i32) -> (i32, i32) {
    %c0_i32 = arith.constant 0 : i32
    %c0_i32_0 = arith.constant 0 : i32
    %c0_i32_1 = arith.constant 0 : i32
    return %c0_i32, %c0_i32_0 : i32, i32
  }
  func.func @transform_4(%arg0: i32) -> (i32, i32) {
    %c0_i32 = arith.constant 0 : i32
    %c0_i32_0 = arith.constant 0 : i32
    %c0_i32_1 = arith.constant 0 : i32
    return %c0_i32, %c0_i32_0 : i32, i32
  }
  func.func @transform_5(%arg0: i32) -> (i32, i32) {
    %c0_i32 = arith.constant 0 : i32
    %c0_i32_0 = arith.constant 0 : i32
    return %c0_i32, %arg0 : i32, i32
  }
  func.func @transform_6(%arg0: i32) -> (i32, i32) {
    %c0_i32 = arith.constant 0 : i32
    %c0_i32_0 = arith.constant 0 : i32
    return %c0_i32, %arg0 : i32, i32
  }
  func.func @transform_7(%arg0: i32) -> (i32, i32) {
    %c0_i32 = arith.constant 0 : i32
    %c0_i32_0 = arith.constant 0 : i32
    return %c0_i32, %arg0 : i32, i32
  }
}

</mosaic_0001>

<bundles_post_ra>
// kernel: tpu_custom_call.1
= control target key start
LH: loop header
LB: loop body
LE: loop exit
PB: predicated region body
PF: predicated region fallthrough
CT: control target
= control target key end

     0   :  { %s822_s0 = inlined_call_operand.hbm [shape: f32[128,128], index: 0, kind: input, shape index: {}]   ;;  %s823_s1 = inlined_call_operand.hbm [shape: f32[128,128], index: 1, kind: input, shape index: {}]   ;;  %s824_s2 = inlined_call_operand.vmem [shape: f32[1,128], index: 2, kind: input, shape index: {}]   ;;  %s825_s3 = inlined_call_operand.vmem [shape: f32[1,128], index: 3, kind: input, shape index: {}]   ;;  %s826_s4 = inlined_call_operand.<no memory space> [shape: f32[1,1], index: 4, kind: input, shape index: {}]   ;;  %s827_s5 = inlined_call_operand.vmem [shape: f32[1,128], index: 5, kind: input, shape index: {}]   ;;  %s828_s6 = inlined_call_operand.hbm [shape: f32[1,128], index: 6, kind: output, shape index: {0}]   ;;  %s829_s7 = inlined_call_operand.hbm [shape: f32[1,128], index: 7, kind: output, shape index: {1}]  }
   0x1   :  { %v13_v0 = vstv %s826_s4 }
   0x2   :  { %14 = vst [vmem:[#allocation2] sm:$0x1] %v13_v0 }
   0x3   :  { %15 = vsyncpa [#allocation4], 0 }
   0x4   :  { %16 = vsyncpa [#allocation7], 0 }
   0x5   :  { %17 = vsyncpa [#allocation5], 0 }
   0x6   :  { %18 = vsyncpa [#allocation10], 0  ;;  %s704_s26 = smov [#allocation3]   ;;  %s608_s30 = scalar_lea.hbm %s822_s0, 2048 }
   0x7   :  { %s24_s27 = sshll.u32 %s704_s26, 4  ;;  %p609_p0 = scmp.ne.s32.totalorder %s822_s0, %s608_s30  ;;  %s25_s27 = int_to_ptr.vmem [resolvable:$true] %s24_s27 }
   0x8   :  { %p612_p1 = scmp.lt.u32.totalorder %s608_s30, %s822_s0 }
   0xa   :  { %p614_p2 = pnand %p612_p1, %p609_p0 }
   0xc   :  { %617 = shalt.err (!%p614_p2)
}
   0xd   :  { %s618_s4 = scalar_lea.vmem %s25_s27, 2048  ;;  %p623_p4 = scmp.lt.s32.totalorder %s25_s27, %s25_s27 }
   0xe   :  { %p619_p3 = scmp.ne.s32.totalorder %s25_s27, %s618_s4  ;;  %p624_p5 = scmp.lt.s32.totalorder %s618_s4, %s618_s4 }
  0x10   :  { %p625_p6 = por %p624_p5, %p623_p4 }
  0x12   :  { %p626_p7 = pnand %p625_p6, %p619_p3 }
  0x14   :  { %629 = shalt.err (!%p626_p7)
}
  0x15   :  { %s705_s12 = smov 128   ;;  %s706_s13 = smov 8  }
  0x16   :  { %30 = dma.hbm_to_vmem [thread:$0]  %s822_s0, 2048, %s25_s27, [#allocation4], %s705_s12, %s705_s12, %s706_s13  }
  0x17   :  { %s707_s16 = smov [#allocation6]   ;;  %s630_s20 = scalar_lea.hbm %s823_s1, 2048 }
  0x18   :  { %s36_s17 = sshll.u32 %s707_s16, 4  ;;  %p631_p8 = scmp.ne.s32.totalorder %s823_s1, %s630_s20  ;;  %s37_s17 = int_to_ptr.vmem [resolvable:$true] %s36_s17 }
  0x19   :  { %p634_p9 = scmp.lt.u32.totalorder %s630_s20, %s823_s1 }
  0x1b   :  { %p636_p10 = pnand %p634_p9, %p631_p8 }
  0x1d   :  { %639 = shalt.err (!%p636_p10)
}
  0x1e   :  { %s640_s25 = scalar_lea.vmem %s37_s17, 2048  ;;  %p645_p12 = scmp.lt.s32.totalorder %s37_s17, %s37_s17 }
  0x1f   :  { %p641_p11 = scmp.ne.s32.totalorder %s37_s17, %s640_s25  ;;  %p646_p13 = scmp.lt.s32.totalorder %s640_s25, %s640_s25 }
  0x21   :  { %p647_p0 = por %p646_p13, %p645_p12 }
  0x23   :  { %p648_p1 = pnand %p647_p0, %p641_p11 }
  0x25   :  { %651 = shalt.err (!%p648_p1)
}
  0x26   :  { %42 = dma.hbm_to_vmem [thread:$0]  %s823_s1, 2048, %s37_s17, [#allocation7], %s705_s12, %s705_s12, %s706_s13  }
  0x27   :  { %696 = dma.done.wait [#allocation4], 2048  }
  0x28   :  { %697 = vsyncadd [#allocation4], 4294965248 }
  0x29   :  { %698 = dma.done.wait [#allocation7], 2048  }
  0x2a   :  { %699 = vsyncadd [#allocation7], 4294965248  ;;  %v73_v1 = vld [vmem:[#allocation6] sm:$0xff]  ;;  %v74_v2 = vld [vmem:[#allocation6 + $0x8] sm:$0xff]  ;;  %v708_v41 = vmov 0.0|0.0   ;;  %vm709_vm0 = vmmov 0  }
  0x2b   :  { %v75_v3 = vld [vmem:[#allocation6 + $0x10] sm:$0xff]  ;;  %v535_v4 = vpack.c.bf16 %v74_v2, %v73_v1  ;;  %v76_v5 = vld [vmem:[#allocation6 + $0x18] sm:$0xff]  ;;  %v77_v7 = vld [vmem:[#allocation6 + $0x20] sm:$0xff]  ;;  %567 = vmatprep.subr.bf16.mxu1 %v708_v41  ;;  %v710_v42 = vmov 0.0   ;;  %v711_v44 = vmov 0   ;;  %s712_s29 = smov [#allocation8]  }
  0x2c   :  { %v539_v6 = vpack.c.bf16 %v76_v5, %v75_v3  ;;  %v78_v8 = vld [vmem:[#allocation6 + $0x28] sm:$0xff]  ;;  %v57_v10 = vld [vmem:[#allocation3] sm:$0xff]  ;;  %v79_v11 = vld [vmem:[#allocation6 + $0x30] sm:$0xff]  ;;  %532 = vmatprep.mubr.msk.f32.mxu1 %vm709_vm0, %v710_v42  ;;  %601 = vset.pattern.permute.xlu0 %v711_v44  ;;  %s370_s30 = sshll.u32 %s712_s29, 4  ;;  %s371_s30 = int_to_ptr.vmem [resolvable:$true] %s370_s30 }
  0x2d   :  { %536 = vmatprep.subr.bf16.mxu0 %v535_v4  ;;  %v543_v9 = vpack.c.bf16 %v78_v8, %v77_v7  ;;  %v80_v12 = vld [vmem:[#allocation6 + $0x38] sm:$0xff]  ;;  %476 = vmatprep.mubr.f32.mxu0 %v57_v10  ;;  %v81_v14 = vld [vmem:[#allocation6 + $0x40] sm:$0xff]  ;;  %v82_v15 = vld [vmem:[#allocation6 + $0x48] sm:$0xff]  ;;  %s656_s8 = scalar_lea.vmem %s371_s30, 32  ;;  %p657_p3 = scmp.lt.s32.totalorder %s371_s30, %s371_s30 }
  0x2e   :  { %538 = vmatpush3.bf16.msra.mxu0 %v535_v4  ;;  %v547_v13 = vpack.c.bf16 %v80_v12, %v79_v11  ;;  %v551_v16 = vpack.c.bf16 %v82_v15, %v81_v14  ;;  %v83_v17 = vld [vmem:[#allocation6 + $0x50] sm:$0xff]  ;;  %v84_v18 = vld [vmem:[#allocation6 + $0x58] sm:$0xff]  ;;  %v85_v20 = vld [vmem:[#allocation6 + $0x60] sm:$0xff] }
  0x2f   :  { %540 = vmatprep.subr.bf16.mxu0 %v539_v6  ;;  %v555_v19 = vpack.c.bf16 %v84_v18, %v83_v17  ;;  %v86_v21 = vld [vmem:[#allocation6 + $0x68] sm:$0xff]  ;;  %v87_v23 = vld [vmem:[#allocation6 + $0x70] sm:$0xff]  ;;  %v88_v24 = vld [vmem:[#allocation6 + $0x78] sm:$0xff] }
  0x30   :  { %v559_v22 = vpack.c.bf16 %v86_v21, %v85_v20  ;;  %v563_v25 = vpack.c.bf16 %v88_v24, %v87_v23  ;;  %v58_v26 = vld [vmem:[#allocation3 + $0x8] sm:$0xff]  ;;  %v59_v27 = vld [vmem:[#allocation3 + $0x10] sm:$0xff]  ;;  %v60_v28 = vld [vmem:[#allocation3 + $0x18] sm:$0xff] }
  0x31   :  { %v61_v29 = vld [vmem:[#allocation3 + $0x20] sm:$0xff]  ;;  %v62_v30 = vld [vmem:[#allocation3 + $0x28] sm:$0xff]  ;;  %v63_v31 = vld [vmem:[#allocation3 + $0x30] sm:$0xff] }
  0x32   :  { %542 = vmatpush3.bf16.msra.mxu0 %v539_v6  ;;  %v64_v32 = vld [vmem:[#allocation3 + $0x38] sm:$0xff]  ;;  %v65_v33 = vld [vmem:[#allocation3 + $0x40] sm:$0xff]  ;;  %v66_v34 = vld [vmem:[#allocation3 + $0x48] sm:$0xff] }
  0x33   :  { %544 = vmatprep.subr.bf16.mxu0 %v543_v9  ;;  %v67_v35 = vld [vmem:[#allocation3 + $0x50] sm:$0xff]  ;;  %v68_v36 = vld [vmem:[#allocation3 + $0x58] sm:$0xff]  ;;  %v69_v37 = vld [vmem:[#allocation3 + $0x60] sm:$0xff] }
  0x34   :  { %v70_v38 = vld [vmem:[#allocation3 + $0x68] sm:$0xff]  ;;  %v71_v39 = vld [vmem:[#allocation3 + $0x70] sm:$0xff]  ;;  %v72_v40 = vld [vmem:[#allocation3 + $0x78] sm:$0xff] }
  0x35   :  { %v258_v43 = vld [vmem:[#allocation2] sm:$0x1] }
  0x36   :  { %546 = vmatpush3.bf16.msra.mxu0 %v543_v9  ;;  %261 = vperm.xlu0 %601, %v258_v43   ;;  %v394_v45 = vld [vmem:[%s824_s2] ss:$0 sm:$0xff] }
  0x37   :  { %548 = vmatprep.subr.bf16.mxu0 %v547_v13 }
  0x3a   :  { %550 = vmatpush3.bf16.msra.mxu0 %v547_v13 }
  0x3b   :  { %552 = vmatprep.subr.bf16.mxu0 %v551_v16 }
  0x3e   :  { %554 = vmatpush3.bf16.msra.mxu0 %v551_v16 }
  0x3f   :  { %556 = vmatprep.subr.bf16.mxu0 %v555_v19 }
  0x42   :  { %558 = vmatpush3.bf16.msra.mxu0 %v555_v19 }
  0x43   :  { %560 = vmatprep.subr.bf16.mxu0 %v559_v22 }
  0x46   :  { %562 = vmatpush3.bf16.msra.mxu0 %v559_v22 }
  0x47   :  { %564 = vmatprep.subr.bf16.mxu0 %v563_v25 }
  0x4a   :  { %566 = vmatpush3.bf16.msra.mxu0 %v563_v25 }
  0x4d   :  { %477 = vmatmul.mubr.f32.vlgmr.msra.gmra.mrb[0].mxu0 %v58_v26 }
  0x4e   :  { %479 = vmatprep.mubr.f32.mxu0 %v59_v27 }
  0x51   :  { %480 = vmatmul.mubr.f32.gmra.mrb[2].mxu0 %v60_v28 }
  0x52   :  { %482 = vmatprep.mubr.f32.mxu0 %v61_v29 }
  0x55   :  { %483 = vmatmul.mubr.f32.gmra.mrb[4].mxu0 %v62_v30 }
  0x56   :  { %485 = vmatprep.mubr.f32.mxu0 %v63_v31 }
  0x59   :  { %486 = vmatmul.mubr.f32.gmra.mrb[6].mxu0 %v64_v32 }
  0x5a   :  { %488 = vmatprep.mubr.f32.mxu0 %v65_v33 }
  0x5d   :  { %489 = vmatmul.mubr.f32.gmra.mrb[8].mxu0 %v66_v34 }
  0x5e   :  { %491 = vmatprep.mubr.f32.mxu0 %v67_v35 }
  0x61   :  { %492 = vmatmul.mubr.f32.gmra.mrb[10].mxu0 %v68_v36 }
  0x62   :  { %494 = vmatprep.mubr.f32.mxu0 %v69_v37 }
  0x65   :  { %495 = vmatmul.mubr.f32.gmra.mrb[12].mxu0 %v70_v38  ;;  %v257_v38 = vld [vmem:[%s825_s3] sm:$0x1]  ;;  %s652_s3 = scalar_lea.vmem %s371_s30, 16 }
  0x66   :  { %497 = vmatprep.mubr.f32.mxu0 %v71_v39  ;;  %v264_v39 = vlaneseq  ;;  %p653_p2 = scmp.ne.s32.totalorder %s371_s30, %s652_s3  ;;  %p658_p4 = scmp.lt.s32.totalorder %s656_s8, %s652_s3 }
  0x68   :  { %p659_p5 = por %p658_p4, %p657_p3 }
  0x69   :  { %498 = vmatmul.mubr.f32.gmra.mrb[14].mxu0 %v72_v40  ;;  %v265_v40 = vshrl.u32 %v264_v39, 7 }
  0x6a   :  { %p660_p6 = pnand %p659_p5, %p653_p2 }
  0x6b   :  { %v266_v42 = vsub.s32 0, %v265_v40 }
  0xb5   :  { %v262_v43 = vpop.permute.xlu0 %261 }
  0xb6   :  { %v267_v44 = vrot.slane %v262_v43, %v266_v42 }
 0x120   :  { %v478_v46 = vpop.f32.mrb[0].mxu0 }
 0x121   :  { %v168_v47 = vadd.f32 %v478_v46, %v394_v45  ;;  %v162_v48 = vpop.f32.mrb[1].mxu0 }
 0x122   :  { %v163_v49 = vadd.f32 %v394_v45, %v162_v48 }
 0x123   :  { %v242_v50 = vmax.f32 %v168_v47, 0.0 }
 0x124   :  { %v241_v51 = vmax.f32 %v163_v49, 0.0  ;;  %v481_v52 = vpop.f32.mrb[2].mxu0 }
 0x125   :  { %v178_v53 = vadd.f32 %v481_v52, %v394_v45  ;;  %v172_v54 = vpop.f32.mrb[3].mxu0 }
 0x126   :  { %v173_v55 = vadd.f32 %v394_v45, %v172_v54  ;;  %v568_v56 = vpack.c.bf16 %v242_v50, %v241_v51 }
 0x127   :  { %v244_v57 = vmax.f32 %v178_v53, 0.0 }
 0x128   :  { %v243_v58 = vmax.f32 %v173_v55, 0.0  ;;  %569 = vmatpush3.bf16.xpose.msra.mxu1 %v568_v56  ;;  %v484_v59 = vpop.f32.mrb[4].mxu0 }
 0x129   :  { %v188_v60 = vadd.f32 %v484_v59, %v394_v45  ;;  %570 = vmatprep.subr.bf16.mxu1 %v708_v41  ;;  %v182_v61 = vpop.f32.mrb[5].mxu0 }
 0x12a   :  { %v571_v62 = vpack.c.bf16 %v244_v57, %v243_v58  ;;  %v183_v63 = vadd.f32 %v394_v45, %v182_v61 }
 0x12b   :  { %v246_v0 = vmax.f32 %v188_v60, 0.0 }
 0x12c   :  { %v245_v1 = vmax.f32 %v183_v63, 0.0  ;;  %v487_v2 = vpop.f32.mrb[6].mxu0 }
 0x12d   :  { %v198_v3 = vadd.f32 %v487_v2, %v394_v45  ;;  %v192_v4 = vpop.f32.mrb[7].mxu0 }
 0x12e   :  { %v574_v5 = vpack.c.bf16 %v246_v0, %v245_v1  ;;  %v193_v6 = vadd.f32 %v394_v45, %v192_v4 }
 0x12f   :  { %v248_v7 = vmax.f32 %v198_v3, 0.0 }
 0x130   :  { %572 = vmatpush3.bf16.xpose.msra.mxu1 %v571_v62  ;;  %v247_v8 = vmax.f32 %v193_v6, 0.0  ;;  %v490_v9 = vpop.f32.mrb[8].mxu0 }
 0x131   :  { %573 = vmatprep.subr.bf16.mxu1 %v708_v41  ;;  %v208_v10 = vadd.f32 %v490_v9, %v394_v45  ;;  %v202_v11 = vpop.f32.mrb[9].mxu0 }
 0x132   :  { %v577_v12 = vpack.c.bf16 %v248_v7, %v247_v8  ;;  %v203_v13 = vadd.f32 %v394_v45, %v202_v11 }
 0x133   :  { %v250_v14 = vmax.f32 %v208_v10, 0.0 }
 0x134   :  { %v249_v15 = vmax.f32 %v203_v13, 0.0  ;;  %v493_v16 = vpop.f32.mrb[10].mxu0 }
 0x135   :  { %v218_v17 = vadd.f32 %v493_v16, %v394_v45  ;;  %v212_v18 = vpop.f32.mrb[11].mxu0 }
 0x136   :  { %v580_v19 = vpack.c.bf16 %v250_v14, %v249_v15  ;;  %v213_v20 = vadd.f32 %v394_v45, %v212_v18 }
 0x137   :  { %v252_v21 = vmax.f32 %v218_v17, 0.0 }
 0x138   :  { %575 = vmatpush3.bf16.xpose.msra.mxu1 %v574_v5  ;;  %v251_v22 = vmax.f32 %v213_v20, 0.0  ;;  %v496_v23 = vpop.f32.mrb[12].mxu0 }
 0x139   :  { %576 = vmatprep.subr.bf16.mxu1 %v708_v41  ;;  %v228_v24 = vadd.f32 %v496_v23, %v394_v45  ;;  %v222_v25 = vpop.f32.mrb[13].mxu0 }
 0x13a   :  { %v583_v26 = vpack.c.bf16 %v252_v21, %v251_v22  ;;  %v223_v27 = vadd.f32 %v394_v45, %v222_v25 }
 0x13b   :  { %v254_v28 = vmax.f32 %v228_v24, 0.0 }
 0x13c   :  { %v253_v29 = vmax.f32 %v223_v27, 0.0  ;;  %v499_v30 = vpop.f32.mrb[14].mxu0 }
 0x13d   :  { %v238_v31 = vadd.f32 %v499_v30, %v394_v45  ;;  %v232_v32 = vpop.f32.mrb[15].mxu0 }
 0x13e   :  { %v586_v33 = vpack.c.bf16 %v254_v28, %v253_v29  ;;  %v233_v34 = vadd.f32 %v394_v45, %v232_v32 }
 0x13f   :  { %v256_v35 = vmax.f32 %v238_v31, 0.0 }
 0x140   :  { %578 = vmatpush3.bf16.xpose.msra.mxu1 %v577_v12  ;;  %v255_v36 = vmax.f32 %v233_v34, 0.0 }
 0x141   :  { %579 = vmatprep.subr.bf16.mxu1 %v708_v41 }
 0x142   :  { %v589_v37 = vpack.c.bf16 %v256_v35, %v255_v36 }
 0x148   :  { %581 = vmatpush3.bf16.xpose.msra.mxu1 %v580_v19 }
 0x149   :  { %582 = vmatprep.subr.bf16.mxu1 %v708_v41 }
 0x150   :  { %584 = vmatpush3.bf16.xpose.msra.mxu1 %v583_v26 }
 0x151   :  { %585 = vmatprep.subr.bf16.mxu1 %v708_v41 }
 0x158   :  { %587 = vmatpush3.bf16.xpose.msra.mxu1 %v586_v33 }
 0x159   :  { %588 = vmatprep.subr.bf16.mxu1 %v708_v41 }
 0x160   :  { %590 = vmatpush3.bf16.xpose.msra.mxu1 %v589_v37 }
 0x167   :  { %533 = vmatmul.mubr.f32.vlgmr.msra.gmra.mrb[0].mxu1 %v257_v38 }
 0x23a   :  { %v334_v45 = vpop.f32.mrb[0].mxu1 }
 0x23b   :  { %v335_v46 = vadd.f32 %v334_v45, %v267_v44  ;;  %v534_v47 = vpop.f32.mrb[1].mxu1 }
 0x23d   :  { %v344_v48 = vand.u32 2147483647, %v335_v46  ;;  %v338_v49 = vmul.f32 0.5, %v335_v46 }
 0x23f   :  { %v345_v50 = vsub.f32 0.0, %v344_v48  ;;  %602 = vtanh.f32 %v338_v49 }
 0x241   :  { %v346_v51 = vmul.f32 1.442695, %v345_v50 }
 0x243   :  { %604 = vpow2.f32 %v346_v51 }
 0x249   :  { %v603_v41 = vpop.eup %602 }
 0x24a   :  { %v340_v52 = vadd.f32 1.0, %v603_v41 }
 0x24c   :  { %v341_v53 = vmul.f32 0.5, %v340_v52 }
 0x24d   :  { %v605_v54 = vpop.eup %604 }
 0x24e   :  { %v348_v55 = vadd.f32 1.0, %v605_v54  ;;  %342 = vst [vmem:[#allocation8] sm:$0x1] %v341_v53 }
 0x24f   :  { %663 = shalt.err (!%p660_p6)
}
 0x250   :  { %s664_s11 = scalar_lea.hbm %s828_s6, 16 }
 0x251   :  { %p665_p7 = scmp.ne.s32.totalorder %s828_s6, %s664_s11  ;;  %p668_p8 = scmp.lt.u32.totalorder %s664_s11, %s828_s6 }
 0x253   :  { %p670_p9 = pnand %p668_p8, %p665_p7 }
 0x255   :  { %673 = shalt.err (!%p670_p9)
}
 0x256   :  { %373 = dma.vmem_to_hbm [thread:$0]  %s371_s30, 16, %s828_s6, [#allocation5]   ;;  %606 = vlog2.f32 %v348_v55  ;;  %v354_v56 = vsub.f32 0.0, %v335_v46  ;;  %v343_v58 = vld [vmem:[%s827_s5] sm:$0x1]  ;;  %v351_v59 = vmin.f32 %v335_v46, 0.0 }
 0x257   :  { %v359_v0 = vsub.f32 1.0, %v343_v58  ;;  %s713_s19 = smov [#allocation9]  }
 0x258   :  { %v355_v60 = vmin.f32 %v354_v56, 0.0  ;;  %s380_s20 = sshll.u32 %s713_s19, 4  ;;  %s381_s20 = int_to_ptr.vmem [resolvable:$true] %s380_s20 }
 0x259   :  { %s674_s6 = scalar_lea.vmem %s381_s20, 16  ;;  %s678_s21 = scalar_lea.vmem %s381_s20, 32 }
 0x25a   :  { %p675_p10 = scmp.ne.s32.totalorder %s381_s20, %s674_s6  ;;  %p679_p11 = scmp.lt.s32.totalorder %s381_s20, %s381_s20 }
 0x25b   :  { %p680_p12 = scmp.lt.s32.totalorder %s678_s21, %s674_s6 }
 0x25d   :  { %p681_p13 = por %p680_p12, %p679_p11 }
 0x25f   :  { %p682_p0 = pnand %p681_p13, %p675_p10 }
 0x260   :  { %v607_v57 = vpop.eup %606 }
 0x261   :  { %v350_v61 = vmul.f32 0.6931472, %v607_v57 }
 0x263   :  { %v352_v62 = vsub.f32 %v351_v59, %v350_v61  ;;  %v356_v63 = vsub.f32 %v355_v60, %v350_v61 }
 0x265   :  { %v353_v1 = vmax.f32 %v352_v62, -100.0  ;;  %v357_v2 = vmax.f32 %v356_v63, -100.0 }
 0x267   :  { %v358_v3 = vmul.f32 %v353_v1, %v343_v58  ;;  %v360_v4 = vmul.f32 %v359_v0, %v357_v2 }
 0x269   :  { %v361_v5 = vadd.f32 %v360_v4, %v358_v3 }
 0x26b   :  { %v362_v6 = vsub.f32 0.0, %v361_v5 }
 0x26d   :  { %363 = vst [vmem:[#allocation9] sm:$0x1] %v362_v6 }
 0x26e   :  { %685 = shalt.err (!%p682_p0)
}
 0x26f   :  { %s686_s23 = scalar_lea.hbm %s829_s7, 16 }
 0x270   :  { %p687_p1 = scmp.ne.s32.totalorder %s829_s7, %s686_s23  ;;  %p690_p2 = scmp.lt.u32.totalorder %s686_s23, %s829_s7 }
 0x272   :  { %p692_p3 = pnand %p690_p2, %p687_p1 }
 0x274   :  { %695 = shalt.err (!%p692_p3)
}
 0x275   :  { %383 = dma.vmem_to_hbm [thread:$0]  %s381_s20, 16, %s829_s7, [#allocation10]  }
 0x276   :  { %700 = dma.done.wait [#allocation5], 16  }
 0x277   :  { %701 = vsyncadd [#allocation5], 4294967280 }
 0x278   :  { %702 = dma.done.wait [#allocation10], 16  }
 0x279   :  { %703 = vsyncadd [#allocation10], 4294967280 }
 0x27a   :  { %390 = vsyncpa [#allocation4], 1 }
 0x27b   :  { %391 = vsyncpa [#allocation7], 1 }
 0x27c   :  { %392 = vsyncpa [#allocation5], 1 }
 0x27d   :  { %393 = vsyncpa [#allocation10], 1 }

// kernel: tpu_custom_call.1
= control target key start
LH: loop header
LB: loop body
LE: loop exit
PB: predicated region body
PF: predicated region fallthrough
CT: control target
= control target key end

     0   :  { %s822_s0 = inlined_call_operand.hbm [shape: f32[128,128], index: 0, kind: input, shape index: {}]   ;;  %s823_s1 = inlined_call_operand.hbm [shape: f32[128,128], index: 1, kind: input, shape index: {}]   ;;  %s824_s2 = inlined_call_operand.vmem [shape: f32[1,128], index: 2, kind: input, shape index: {}]   ;;  %s825_s3 = inlined_call_operand.vmem [shape: f32[1,128], index: 3, kind: input, shape index: {}]   ;;  %s826_s4 = inlined_call_operand.<no memory space> [shape: f32[1,1], index: 4, kind: input, shape index: {}]   ;;  %s827_s5 = inlined_call_operand.vmem [shape: f32[1,128], index: 5, kind: input, shape index: {}]   ;;  %s828_s6 = inlined_call_operand.hbm [shape: f32[1,128], index: 6, kind: output, shape index: {0}]   ;;  %s829_s7 = inlined_call_operand.hbm [shape: f32[1,128], index: 7, kind: output, shape index: {1}]  }
   0x1   :  { %v13_v0 = vstv %s826_s4 }
   0x2   :  { %14 = vst [vmem:[#allocation2] sm:$0x1] %v13_v0 }
   0x3   :  { %15 = vsyncpa [#allocation4], 0 }
   0x4   :  { %16 = vsyncpa [#allocation7], 0 }
   0x5   :  { %17 = vsyncpa [#allocation5], 0 }
   0x6   :  { %18 = vsyncpa [#allocation10], 0  ;;  %s704_s26 = smov [#allocation3]   ;;  %s608_s30 = scalar_lea.hbm %s822_s0, 2048 }
   0x7   :  { %s24_s27 = sshll.u32 %s704_s26, 4  ;;  %p609_p0 = scmp.ne.s32.totalorder %s822_s0, %s608_s30  ;;  %s25_s27 = int_to_ptr.vmem [resolvable:$true] %s24_s27 }
   0x8   :  { %p612_p1 = scmp.lt.u32.totalorder %s608_s30, %s822_s0 }
   0xa   :  { %p614_p2 = pnand %p612_p1, %p609_p0 }
   0xc   :  { %617 = shalt.err (!%p614_p2)
}
   0xd   :  { %s618_s4 = scalar_lea.vmem %s25_s27, 2048  ;;  %p623_p4 = scmp.lt.s32.totalorder %s25_s27, %s25_s27 }
   0xe   :  { %p619_p3 = scmp.ne.s32.totalorder %s25_s27, %s618_s4  ;;  %p624_p5 = scmp.lt.s32.totalorder %s618_s4, %s618_s4 }
  0x10   :  { %p625_p6 = por %p624_p5, %p623_p4 }
  0x12   :  { %p626_p7 = pnand %p625_p6, %p619_p3 }
  0x14   :  { %629 = shalt.err (!%p626_p7)
}
  0x15   :  { %s705_s12 = smov 128   ;;  %s706_s13 = smov 8  }
  0x16   :  { %30 = dma.hbm_to_vmem [thread:$0]  %s822_s0, 2048, %s25_s27, [#allocation4], %s705_s12, %s705_s12, %s706_s13  }
  0x17   :  { %s707_s16 = smov [#allocation6]   ;;  %s630_s20 = scalar_lea.hbm %s823_s1, 2048 }
  0x18   :  { %s36_s17 = sshll.u32 %s707_s16, 4  ;;  %p631_p8 = scmp.ne.s32.totalorder %s823_s1, %s630_s20  ;;  %s37_s17 = int_to_ptr.vmem [resolvable:$true] %s36_s17 }
  0x19   :  { %p634_p9 = scmp.lt.u32.totalorder %s630_s20, %s823_s1 }
  0x1b   :  { %p636_p10 = pnand %p634_p9, %p631_p8 }
  0x1d   :  { %639 = shalt.err (!%p636_p10)
}
  0x1e   :  { %s640_s25 = scalar_lea.vmem %s37_s17, 2048  ;;  %p645_p12 = scmp.lt.s32.totalorder %s37_s17, %s37_s17 }
  0x1f   :  { %p641_p11 = scmp.ne.s32.totalorder %s37_s17, %s640_s25  ;;  %p646_p13 = scmp.lt.s32.totalorder %s640_s25, %s640_s25 }
  0x21   :  { %p647_p0 = por %p646_p13, %p645_p12 }
  0x23   :  { %p648_p1 = pnand %p647_p0, %p641_p11 }
  0x25   :  { %651 = shalt.err (!%p648_p1)
}
  0x26   :  { %42 = dma.hbm_to_vmem [thread:$0]  %s823_s1, 2048, %s37_s17, [#allocation7], %s705_s12, %s705_s12, %s706_s13  }
  0x27   :  { %696 = dma.done.wait [#allocation4], 2048  }
  0x28   :  { %697 = vsyncadd [#allocation4], 4294965248 }
  0x29   :  { %698 = dma.done.wait [#allocation7], 2048  }
  0x2a   :  { %699 = vsyncadd [#allocation7], 4294965248  ;;  %v73_v1 = vld [vmem:[#allocation6] sm:$0xff]  ;;  %v74_v2 = vld [vmem:[#allocation6 + $0x8] sm:$0xff]  ;;  %v708_v41 = vmov 0.0|0.0   ;;  %vm709_vm0 = vmmov 0  }
  0x2b   :  { %v75_v3 = vld [vmem:[#allocation6 + $0x10] sm:$0xff]  ;;  %v535_v4 = vpack.c.bf16 %v74_v2, %v73_v1  ;;  %v76_v5 = vld [vmem:[#allocation6 + $0x18] sm:$0xff]  ;;  %v77_v7 = vld [vmem:[#allocation6 + $0x20] sm:$0xff]  ;;  %567 = vmatprep.subr.bf16.mxu1 %v708_v41  ;;  %v710_v42 = vmov 0.0   ;;  %v711_v44 = vmov 0   ;;  %s712_s29 = smov [#allocation8]  }
  0x2c   :  { %v539_v6 = vpack.c.bf16 %v76_v5, %v75_v3  ;;  %v78_v8 = vld [vmem:[#allocation6 + $0x28] sm:$0xff]  ;;  %v57_v10 = vld [vmem:[#allocation3] sm:$0xff]  ;;  %v79_v11 = vld [vmem:[#allocation6 + $0x30] sm:$0xff]  ;;  %532 = vmatprep.mubr.msk.f32.mxu1 %vm709_vm0, %v710_v42  ;;  %601 = vset.pattern.permute.xlu0 %v711_v44  ;;  %s370_s30 = sshll.u32 %s712_s29, 4  ;;  %s371_s30 = int_to_ptr.vmem [resolvable:$true] %s370_s30 }
  0x2d   :  { %536 = vmatprep.subr.bf16.mxu0 %v535_v4  ;;  %v543_v9 = vpack.c.bf16 %v78_v8, %v77_v7  ;;  %v80_v12 = vld [vmem:[#allocation6 + $0x38] sm:$0xff]  ;;  %476 = vmatprep.mubr.f32.mxu0 %v57_v10  ;;  %v81_v14 = vld [vmem:[#allocation6 + $0x40] sm:$0xff]  ;;  %v82_v15 = vld [vmem:[#allocation6 + $0x48] sm:$0xff]  ;;  %s656_s8 = scalar_lea.vmem %s371_s30, 32  ;;  %p657_p3 = scmp.lt.s32.totalorder %s371_s30, %s371_s30 }
  0x2e   :  { %538 = vmatpush3.bf16.msra.mxu0 %v535_v4  ;;  %v547_v13 = vpack.c.bf16 %v80_v12, %v79_v11  ;;  %v551_v16 = vpack.c.bf16 %v82_v15, %v81_v14  ;;  %v83_v17 = vld [vmem:[#allocation6 + $0x50] sm:$0xff]  ;;  %v84_v18 = vld [vmem:[#allocation6 + $0x58] sm:$0xff]  ;;  %v85_v20 = vld [vmem:[#allocation6 + $0x60] sm:$0xff] }
  0x2f   :  { %540 = vmatprep.subr.bf16.mxu0 %v539_v6  ;;  %v555_v19 = vpack.c.bf16 %v84_v18, %v83_v17  ;;  %v86_v21 = vld [vmem:[#allocation6 + $0x68] sm:$0xff]  ;;  %v87_v23 = vld [vmem:[#allocation6 + $0x70] sm:$0xff]  ;;  %v88_v24 = vld [vmem:[#allocation6 + $0x78] sm:$0xff] }
  0x30   :  { %v559_v22 = vpack.c.bf16 %v86_v21, %v85_v20  ;;  %v563_v25 = vpack.c.bf16 %v88_v24, %v87_v23  ;;  %v58_v26 = vld [vmem:[#allocation3 + $0x8] sm:$0xff]  ;;  %v59_v27 = vld [vmem:[#allocation3 + $0x10] sm:$0xff]  ;;  %v60_v28 = vld [vmem:[#allocation3 + $0x18] sm:$0xff] }
  0x31   :  { %v61_v29 = vld [vmem:[#allocation3 + $0x20] sm:$0xff]  ;;  %v62_v30 = vld [vmem:[#allocation3 + $0x28] sm:$0xff]  ;;  %v63_v31 = vld [vmem:[#allocation3 + $0x30] sm:$0xff] }
  0x32   :  { %542 = vmatpush3.bf16.msra.mxu0 %v539_v6  ;;  %v64_v32 = vld [vmem:[#allocation3 + $0x38] sm:$0xff]  ;;  %v65_v33 = vld [vmem:[#allocation3 + $0x40] sm:$0xff]  ;;  %v66_v34 = vld [vmem:[#allocation3 + $0x48] sm:$0xff] }
  0x33   :  { %544 = vmatprep.subr.bf16.mxu0 %v543_v9  ;;  %v67_v35 = vld [vmem:[#allocation3 + $0x50] sm:$0xff]  ;;  %v68_v36 = vld [vmem:[#allocation3 + $0x58] sm:$0xff]  ;;  %v69_v37 = vld [vmem:[#allocation3 + $0x60] sm:$0xff] }
  0x34   :  { %v70_v38 = vld [vmem:[#allocation3 + $0x68] sm:$0xff]  ;;  %v71_v39 = vld [vmem:[#allocation3 + $0x70] sm:$0xff]  ;;  %v72_v40 = vld [vmem:[#allocation3 + $0x78] sm:$0xff] }
  0x35   :  { %v258_v43 = vld [vmem:[#allocation2] sm:$0x1] }
  0x36   :  { %546 = vmatpush3.bf16.msra.mxu0 %v543_v9  ;;  %261 = vperm.xlu0 %601, %v258_v43   ;;  %v394_v45 = vld [vmem:[%s824_s2] ss:$0 sm:$0xff] }
  0x37   :  { %548 = vmatprep.subr.bf16.mxu0 %v547_v13 }
  0x3a   :  { %550 = vmatpush3.bf16.msra.mxu0 %v547_v13 }
  0x3b   :  { %552 = vmatprep.subr.bf16.mxu0 %v551_v16 }
  0x3e   :  { %554 = vmatpush3.bf16.msra.mxu0 %v551_v16 }
  0x3f   :  { %556 = vmatprep.subr.bf16.mxu0 %v555_v19 }
  0x42   :  { %558 = vmatpush3.bf16.msra.mxu0 %v555_v19 }
  0x43   :  { %560 = vmatprep.subr.bf16.mxu0 %v559_v22 }
  0x46   :  { %562 = vmatpush3.bf16.msra.mxu0 %v559_v22 }
  0x47   :  { %564 = vmatprep.subr.bf16.mxu0 %v563_v25 }
  0x4a   :  { %566 = vmatpush3.bf16.msra.mxu0 %v563_v25 }
  0x4d   :  { %477 = vmatmul.mubr.f32.vlgmr.msra.gmra.mrb[0].mxu0 %v58_v26 }
  0x4e   :  { %479 = vmatprep.mubr.f32.mxu0 %v59_v27 }
  0x51   :  { %480 = vmatmul.mubr.f32.gmra.mrb[2].mxu0 %v60_v28 }
  0x52   :  { %482 = vmatprep.mubr.f32.mxu0 %v61_v29 }
  0x55   :  { %483 = vmatmul.mubr.f32.gmra.mrb[4].mxu0 %v62_v30 }
  0x56   :  { %485 = vmatprep.mubr.f32.mxu0 %v63_v31 }
  0x59   :  { %486 = vmatmul.mubr.f32.gmra.mrb[6].mxu0 %v64_v32 }
  0x5a   :  { %488 = vmatprep.mubr.f32.mxu0 %v65_v33 }
  0x5d   :  { %489 = vmatmul.mubr.f32.gmra.mrb[8].mxu0 %v66_v34 }
  0x5e   :  { %491 = vmatprep.mubr.f32.mxu0 %v67_v35 }
  0x61   :  { %492 = vmatmul.mubr.f32.gmra.mrb[10].mxu0 %v68_v36 }
  0x62   :  { %494 = vmatprep.mubr.f32.mxu0 %v69_v37 }
  0x65   :  { %495 = vmatmul.mubr.f32.gmra.mrb[12].mxu0 %v70_v38  ;;  %v257_v38 = vld [vmem:[%s825_s3] sm:$0x1]  ;;  %s652_s3 = scalar_lea.vmem %s371_s30, 16 }
  0x66   :  { %497 = vmatprep.mubr.f32.mxu0 %v71_v39  ;;  %v264_v39 = vlaneseq  ;;  %p653_p2 = scmp.ne.s32.totalorder %s371_s30, %s652_s3  ;;  %p658_p4 = scmp.lt.s32.totalorder %s656_s8, %s652_s3 }
  0x68   :  { %p659_p5 = por %p658_p4, %p657_p3 }
  0x69   :  { %498 = vmatmul.mubr.f32.gmra.mrb[14].mxu0 %v72_v40  ;;  %v265_v40 = vshrl.u32 %v264_v39, 7 }
  0x6a   :  { %p660_p6 = pnand %p659_p5, %p653_p2 }
  0x6b   :  { %v266_v42 = vsub.s32 0, %v265_v40 }
  0xb5   :  { %v262_v43 = vpop.permute.xlu0 %261 }
  0xb6   :  { %v267_v44 = vrot.slane %v262_v43, %v266_v42 }
 0x120   :  { %v478_v46 = vpop.f32.mrb[0].mxu0 }
 0x121   :  { %v168_v47 = vadd.f32 %v478_v46, %v394_v45  ;;  %v162_v48 = vpop.f32.mrb[1].mxu0 }
 0x122   :  { %v163_v49 = vadd.f32 %v394_v45, %v162_v48 }
 0x123   :  { %v242_v50 = vmax.f32 %v168_v47, 0.0 }
 0x124   :  { %v241_v51 = vmax.f32 %v163_v49, 0.0  ;;  %v481_v52 = vpop.f32.mrb[2].mxu0 }
 0x125   :  { %v178_v53 = vadd.f32 %v481_v52, %v394_v45  ;;  %v172_v54 = vpop.f32.mrb[3].mxu0 }
 0x126   :  { %v173_v55 = vadd.f32 %v394_v45, %v172_v54  ;;  %v568_v56 = vpack.c.bf16 %v242_v50, %v241_v51 }
 0x127   :  { %v244_v57 = vmax.f32 %v178_v53, 0.0 }
 0x128   :  { %v243_v58 = vmax.f32 %v173_v55, 0.0  ;;  %569 = vmatpush3.bf16.xpose.msra.mxu1 %v568_v56  ;;  %v484_v59 = vpop.f32.mrb[4].mxu0 }
 0x129   :  { %v188_v60 = vadd.f32 %v484_v59, %v394_v45  ;;  %570 = vmatprep.subr.bf16.mxu1 %v708_v41  ;;  %v182_v61 = vpop.f32.mrb[5].mxu0 }
 0x12a   :  { %v571_v62 = vpack.c.bf16 %v244_v57, %v243_v58  ;;  %v183_v63 = vadd.f32 %v394_v45, %v182_v61 }
 0x12b   :  { %v246_v0 = vmax.f32 %v188_v60, 0.0 }
 0x12c   :  { %v245_v1 = vmax.f32 %v183_v63, 0.0  ;;  %v487_v2 = vpop.f32.mrb[6].mxu0 }
 0x12d   :  { %v198_v3 = vadd.f32 %v487_v2, %v394_v45  ;;  %v192_v4 = vpop.f32.mrb[7].mxu0 }
 0x12e   :  { %v574_v5 = vpack.c.bf16 %v246_v0, %v245_v1  ;;  %v193_v6 = vadd.f32 %v394_v45, %v192_v4 }
 0x12f   :  { %v248_v7 = vmax.f32 %v198_v3, 0.0 }
 0x130   :  { %572 = vmatpush3.bf16.xpose.msra.mxu1 %v571_v62  ;;  %v247_v8 = vmax.f32 %v193_v6, 0.0  ;;  %v490_v9 = vpop.f32.mrb[8].mxu0 }
 0x131   :  { %573 = vmatprep.subr.bf16.mxu1 %v708_v41  ;;  %v208_v10 = vadd.f32 %v490_v9, %v394_v45  ;;  %v202_v11 = vpop.f32.mrb[9].mxu0 }
 0x132   :  { %v577_v12 = vpack.c.bf16 %v248_v7, %v247_v8  ;;  %v203_v13 = vadd.f32 %v394_v45, %v202_v11 }
 0x133   :  { %v250_v14 = vmax.f32 %v208_v10, 0.0 }
 0x134   :  { %v249_v15 = vmax.f32 %v203_v13, 0.0  ;;  %v493_v16 = vpop.f32.mrb[10].mxu0 }
 0x135   :  { %v218_v17 = vadd.f32 %v493_v16, %v394_v45  ;;  %v212_v18 = vpop.f32.mrb[11].mxu0 }
 0x136   :  { %v580_v19 = vpack.c.bf16 %v250_v14, %v249_v15  ;;  %v213_v20 = vadd.f32 %v394_v45, %v212_v18 }
 0x137   :  { %v252_v21 = vmax.f32 %v218_v17, 0.0 }
 0x138   :  { %575 = vmatpush3.bf16.xpose.msra.mxu1 %v574_v5  ;;  %v251_v22 = vmax.f32 %v213_v20, 0.0  ;;  %v496_v23 = vpop.f32.mrb[12].mxu0 }
 0x139   :  { %576 = vmatprep.subr.bf16.mxu1 %v708_v41  ;;  %v228_v24 = vadd.f32 %v496_v23, %v394_v45  ;;  %v222_v25 = vpop.f32.mrb[13].mxu0 }
 0x13a   :  { %v583_v26 = vpack.c.bf16 %v252_v21, %v251_v22  ;;  %v223_v27 = vadd.f32 %v394_v45, %v222_v25 }
 0x13b   :  { %v254_v28 = vmax.f32 %v228_v24, 0.0 }
 0x13c   :  { %v253_v29 = vmax.f32 %v223_v27, 0.0  ;;  %v499_v30 = vpop.f32.mrb[14].mxu0 }
 0x13d   :  { %v238_v31 = vadd.f32 %v499_v30, %v394_v45  ;;  %v232_v32 = vpop.f32.mrb[15].mxu0 }
 0x13e   :  { %v586_v33 = vpack.c.bf16 %v254_v28, %v253_v29  ;;  %v233_v34 = vadd.f32 %v394_v45, %v232_v32 }
 0x13f   :  { %v256_v35 = vmax.f32 %v238_v31, 0.0 }
 0x140   :  { %578 = vmatpush3.bf16.xpose.msra.mxu1 %v577_v12  ;;  %v255_v36 = vmax.f32 %v233_v34, 0.0 }
 0x141   :  { %579 = vmatprep.subr.bf16.mxu1 %v708_v41 }
 0x142   :  { %v589_v37 = vpack.c.bf16 %v256_v35, %v255_v36 }
 0x148   :  { %581 = vmatpush3.bf16.xpose.msra.mxu1 %v580_v19 }
 0x149   :  { %582 = vmatprep.subr.bf16.mxu1 %v708_v41 }
 0x150   :  { %584 = vmatpush3.bf16.xpose.msra.mxu1 %v583_v26 }
 0x151   :  { %585 = vmatprep.subr.bf16.mxu1 %v708_v41 }
 0x158   :  { %587 = vmatpush3.bf16.xpose.msra.mxu1 %v586_v33 }
 0x159   :  { %588 = vmatprep.subr.bf16.mxu1 %v708_v41 }
 0x160   :  { %590 = vmatpush3.bf16.xpose.msra.mxu1 %v589_v37 }
 0x167   :  { %533 = vmatmul.mubr.f32.vlgmr.msra.gmra.mrb[0].mxu1 %v257_v38 }
 0x23a   :  { %v334_v45 = vpop.f32.mrb[0].mxu1 }
 0x23b   :  { %v335_v46 = vadd.f32 %v334_v45, %v267_v44  ;;  %v534_v47 = vpop.f32.mrb[1].mxu1 }
 0x23d   :  { %v344_v48 = vand.u32 2147483647, %v335_v46  ;;  %v338_v49 = vmul.f32 0.5, %v335_v46 }
 0x23f   :  { %v345_v50 = vsub.f32 0.0, %v344_v48  ;;  %602 = vtanh.f32 %v338_v49 }
 0x241   :  { %v346_v51 = vmul.f32 1.442695, %v345_v50 }
 0x243   :  { %604 = vpow2.f32 %v346_v51 }
 0x249   :  { %v603_v41 = vpop.eup %602 }
 0x24a   :  { %v340_v52 = vadd.f32 1.0, %v603_v41 }
 0x24c   :  { %v341_v53 = vmul.f32 0.5, %v340_v52 }
 0x24d   :  { %v605_v54 = vpop.eup %604 }
 0x24e   :  { %v348_v55 = vadd.f32 1.0, %v605_v54  ;;  %342 = vst [vmem:[#allocation8] sm:$0x1] %v341_v53 }
 0x24f   :  { %663 = shalt.err (!%p660_p6)
}
 0x250   :  { %s664_s11 = scalar_lea.hbm %s828_s6, 16 }
 0x251   :  { %p665_p7 = scmp.ne.s32.totalorder %s828_s6, %s664_s11  ;;  %p668_p8 = scmp.lt.u32.totalorder %s664_s11, %s828_s6 }
 0x253   :  { %p670_p9 = pnand %p668_p8, %p665_p7 }
 0x255   :  { %673 = shalt.err (!%p670_p9)
}
 0x256   :  { %373 = dma.vmem_to_hbm [thread:$0]  %s371_s30, 16, %s828_s6, [#allocation5]   ;;  %606 = vlog2.f32 %v348_v55  ;;  %v354_v56 = vsub.f32 0.0, %v335_v46  ;;  %v343_v58 = vld [vmem:[%s827_s5] sm:$0x1]  ;;  %v351_v59 = vmin.f32 %v335_v46, 0.0 }
 0x257   :  { %v359_v0 = vsub.f32 1.0, %v343_v58  ;;  %s713_s19 = smov [#allocation9]  }
 0x258   :  { %v355_v60 = vmin.f32 %v354_v56, 0.0  ;;  %s380_s20 = sshll.u32 %s713_s19, 4  ;;  %s381_s20 = int_to_ptr.vmem [resolvable:$true] %s380_s20 }
 0x259   :  { %s674_s6 = scalar_lea.vmem %s381_s20, 16  ;;  %s678_s21 = scalar_lea.vmem %s381_s20, 32 }
 0x25a   :  { %p675_p10 = scmp.ne.s32.totalorder %s381_s20, %s674_s6  ;;  %p679_p11 = scmp.lt.s32.totalorder %s381_s20, %s381_s20 }
 0x25b   :  { %p680_p12 = scmp.lt.s32.totalorder %s678_s21, %s674_s6 }
 0x25d   :  { %p681_p13 = por %p680_p12, %p679_p11 }
 0x25f   :  { %p682_p0 = pnand %p681_p13, %p675_p10 }
 0x260   :  { %v607_v57 = vpop.eup %606 }
 0x261   :  { %v350_v61 = vmul.f32 0.6931472, %v607_v57 }
 0x263   :  { %v352_v62 = vsub.f32 %v351_v59, %v350_v61  ;;  %v356_v63 = vsub.f32 %v355_v60, %v350_v61 }
 0x265   :  { %v353_v1 = vmax.f32 %v352_v62, -100.0  ;;  %v357_v2 = vmax.f32 %v356_v63, -100.0 }
 0x267   :  { %v358_v3 = vmul.f32 %v353_v1, %v343_v58  ;;  %v360_v4 = vmul.f32 %v359_v0, %v357_v2 }
 0x269   :  { %v361_v5 = vadd.f32 %v360_v4, %v358_v3 }
 0x26b   :  { %v362_v6 = vsub.f32 0.0, %v361_v5 }
 0x26d   :  { %363 = vst [vmem:[#allocation9] sm:$0x1] %v362_v6 }
 0x26e   :  { %685 = shalt.err (!%p682_p0)
}
 0x26f   :  { %s686_s23 = scalar_lea.hbm %s829_s7, 16 }
 0x270   :  { %p687_p1 = scmp.ne.s32.totalorder %s829_s7, %s686_s23  ;;  %p690_p2 = scmp.lt.u32.totalorder %s686_s23, %s829_s7 }
 0x272   :  { %p692_p3 = pnand %p690_p2, %p687_p1 }
 0x274   :  { %695 = shalt.err (!%p692_p3)
}
 0x275   :  { %383 = dma.vmem_to_hbm [thread:$0]  %s381_s20, 16, %s829_s7, [#allocation10]  }
 0x276   :  { %700 = dma.done.wait [#allocation5], 16  }
 0x277   :  { %701 = vsyncadd [#allocation5], 4294967280 }
 0x278   :  { %702 = dma.done.wait [#allocation10], 16  }
 0x279   :  { %703 = vsyncadd [#allocation10], 4294967280 }
 0x27a   :  { %390 = vsyncpa [#allocation4], 1 }
 0x27b   :  { %391 = vsyncpa [#allocation7], 1 }
 0x27c   :  { %392 = vsyncpa [#allocation5], 1 }
 0x27d   :  { %393 = vsyncpa [#allocation10], 1 }

</bundles_post_ra>
